<compile_context>
chip_gen: v5e
topology: v5e:2x2
jax: 0.10.0
libtpu: 0.0.40
codegen_flags: <defaults>
</compile_context>

<pallas_src>
import jax
import jax.numpy as jnp
from jax.experimental import pallas as pl
from jax.experimental.pallas import tpu as pltpu


def _pguts_kernel(h_ref, mask_ref, w1bd_ref, dd_ref, b1_ref, w2bd_ref, b2_ref,
                  o_ref):
    # h_ref:    (TM, N*H)   bf16  hidden-state rows (one row per (b, t))
    # mask_ref: (TM, N)     bf16  per-(row, node) mask (1.0 = present, 0.0 = missing)
    # w1bd_ref: (N*H, N*H)  bf16  block-diagonal sum_l W1_l
    # dd_ref:   (N, N*H)    bf16  per-node (presB - missB) placed block-diagonally
    # b1_ref:   (1, N*H)    f32   missB[node] + b1, concatenated over nodes
    # w2bd_ref: (N*H, N*H)  bf16  block-diagonal W2
    # b2_ref:   (1, N*H)    f32   b2 tiled over nodes
    h = h_ref[...]
    m = mask_ref[...]

    # First MLP layer with the embedding select folded in (all linear, exact
    # for mask in {0, 1}):
    #   y = h @ W1_sum + mask * (presB - missB)[node] + (missB[node] + b1)
    y = jnp.dot(h, w1bd_ref[...], preferred_element_type=jnp.float32)
    y = y + jnp.dot(m, dd_ref[...], preferred_element_type=jnp.float32)
    y = jnp.maximum(y + b1_ref[...], 0.0)

    # Second MLP layer (bf16 MXU, f32 accumulate).
    y = jnp.dot(y.astype(jnp.bfloat16), w2bd_ref[...],
                preferred_element_type=jnp.float32)
    y = jnp.maximum(y + b2_ref[...], 0.0)

    o_ref[...] = y.astype(o_ref.dtype)


def _round_up(x, m):
    return pl.cdiv(x, m) * m


def pguts_layer_forward(h, mask, node_index, params, *, tm=4096,
                        out_dtype=jnp.bfloat16):
    """h: (B, T, N, H), mask: (B, T, N, 1), node_index: (N,) i32.

    Returns (B, T, N, H) in `out_dtype` (bf16 by default to keep the kernel's
    output HBM traffic half-width; cast in the caller if f32 is required).
    """
    B, T, N, H = h.shape
    BT = B * T
    NH = N * H

    pres_tbl = params["present_emb"]                     # (L, n_nodes, H)
    miss_tbl = params["missing_emb"]                     # (L, n_nodes, H)
    L = pres_tbl.shape[0]
    W1 = params["w1"].astype(jnp.float32)                # (L*H, H)
    b1 = params["b1"].astype(jnp.float32)                # (H,)
    W2 = params["w2"].astype(jnp.float32)                # (H, H)
    b2 = params["b2"].astype(jnp.float32)                # (H,)

    # ---- wrapper-side algebraic precompute (tiny, done once, in f32) --------
    W1_l = W1.reshape(L, H, H)                           # per-branch W1 slices
    W1_sum = W1_l.sum(axis=0)                            # (H, H)

    pres_nodes = pres_tbl[:, node_index, :].astype(jnp.float32)   # (L, N, H)
    miss_nodes = miss_tbl[:, node_index, :].astype(jnp.float32)   # (L, N, H)
    presB = jnp.einsum("lnj,ljk->nk", pres_nodes, W1_l)           # (N, H)
    missB = jnp.einsum("lnj,ljk->nk", miss_nodes, W1_l)           # (N, H)
    bias1 = missB + b1[None, :]                                   # (N, H)
    delta = presB - missB                                         # (N, H)

    eye_n = jnp.eye(N, dtype=jnp.float32)
    # Block-diagonal expansions so the kernel stays 2-D and lane-dense
    # (designed for small N*H; N*H = 128 at the module's shapes).
    w1_bd = jnp.einsum("nm,jk->njmk", eye_n, W1_sum).reshape(NH, NH)
    w2_bd = jnp.einsum("nm,jk->njmk", eye_n, W2).reshape(NH, NH)
    d_delta = jnp.einsum("pn,nk->pnk", eye_n, delta).reshape(N, NH)
    w1_bd = w1_bd.astype(jnp.bfloat16)
    w2_bd = w2_bd.astype(jnp.bfloat16)
    d_delta = d_delta.astype(jnp.bfloat16)
    b1_flat = bias1.reshape(1, NH)                       # f32 (kept exact)
    b2_flat = jnp.tile(b2, N).reshape(1, NH)             # f32

    # ---- streamed tensors: bf16, no whole-array padding ----------------------
    h_flat = h.reshape(BT, NH).astype(jnp.bfloat16)
    # (mask != 0) mirrors torch's mask.bool(); {0,1} is exact in bf16.
    mask2 = (mask.reshape(BT, N) != 0).astype(jnp.bfloat16)

    # ---- row tiling: big tiles, but >= ~8 grid steps for v7x's 2 TCs ---------
    bt8 = int(_round_up(BT, 8))
    tm_target = max(512, int(_round_up(pl.cdiv(bt8, 8), 8)))
    tm_eff = int(_round_up(min(int(tm), tm_target, bt8), 8))
    grid = (int(pl.cdiv(BT, tm_eff)),)   # ragged last tile handled by Pallas

    out_flat = pl.pallas_call(
        _pguts_kernel,
        out_shape=jax.ShapeDtypeStruct((BT, NH), out_dtype),
        grid_spec=pltpu.PrefetchScalarGridSpec(
            num_scalar_prefetch=0,
            grid=grid,
            in_specs=[
                pl.BlockSpec((tm_eff, NH), lambda i: (i, 0)),   # h rows (bf16)
                pl.BlockSpec((tm_eff, N), lambda i: (i, 0)),    # mask rows (bf16)
                pl.BlockSpec((NH, NH), lambda i: (0, 0)),       # W1 block-diag (resident)
                pl.BlockSpec((N, NH), lambda i: (0, 0)),        # delta block-diag
                pl.BlockSpec((1, NH), lambda i: (0, 0)),        # bias1 (f32)
                pl.BlockSpec((NH, NH), lambda i: (0, 0)),       # W2 block-diag
                pl.BlockSpec((1, NH), lambda i: (0, 0)),        # bias2 (f32)
            ],
            out_specs=pl.BlockSpec((tm_eff, NH), lambda i: (i, 0)),
        ),
        compiler_params=pltpu.CompilerParams(
            dimension_semantics=("parallel",),
            vmem_limit_bytes=32 * 1024 * 1024),
    )(h_flat, mask2, w1_bd, d_delta, b1_flat, w2_bd, b2_flat)

    return out_flat.reshape(B, T, N, H)


def _reference_forward(h, mask, node_index, params):
    """Pure-JAX f32 reference mirroring the PyTorch forward (encoder = identity)."""
    L = params["present_emb"].shape[0]
    outs = []
    m = mask != 0.0
    for l in range(L):
        pres = params["present_emb"][l][node_index]   # (N, H)
        miss = params["missing_emb"][l][node_index]
        h_l = jnp.where(m, h + pres, h + miss)
        outs.append(h_l)
    x = jnp.concatenate(outs, axis=-1)
    y = jnp.maximum(x @ params["w1"] + params["b1"], 0.0)
    y = jnp.maximum(y @ params["w2"] + params["b2"], 0.0)
    return y


if __name__ == "__main__":
    # Small shapes implied by the module:
    #   window=T=8, n_nodes=N=4, hidden_size=H=32, factor_t=[1, 2] -> L=2 branches
    B, T, N, H = 2, 8, 4, 32
    factor_t = [1, 2]
    L = len(factor_t)

    key = jax.random.PRNGKey(0)
    k_h, k_m, k_pe, k_me, k_w1, k_b1, k_w2, k_b2 = jax.random.split(key, 8)

    h = jax.random.normal(k_h, (B, T, N, H), dtype=jnp.float32)
    mask = (jax.random.uniform(k_m, (B, T, N, 1)) > 0.5).astype(jnp.float32)
    node_index = jnp.arange(N, dtype=jnp.int32)

    params = {
        "present_emb": 0.1 * jax.random.normal(k_pe, (L, N, H), dtype=jnp.float32),
        "missing_emb": 0.1 * jax.random.normal(k_me, (L, N, H), dtype=jnp.float32),
        "w1": 0.1 * jax.random.normal(k_w1, (L * H, H), dtype=jnp.float32),
        "b1": 0.1 * jax.random.normal(k_b1, (H,), dtype=jnp.float32),
        "w2": 0.1 * jax.random.normal(k_w2, (H, H), dtype=jnp.float32),
        "b2": 0.1 * jax.random.normal(k_b2, (H,), dtype=jnp.float32),
    }

    out = pguts_layer_forward(h, mask, node_index, params)
    out = jax.block_until_ready(out)

    ref = _reference_forward(h, mask, node_index, params)
    assert out.shape == (B, T, N, H)
    # bf16-streamed kernel vs f32 reference: relaxed tolerance.
    assert jnp.allclose(out.astype(jnp.float32), ref, atol=5e-2, rtol=5e-2)

    print("KERNEL_OK")
</pallas_src>

<mosaic_0001>
module attributes {stable_mosaic.version = 11 : i64} {
  func.func @_pguts_kernel(%arg0: i32, %arg1: memref<16x128xbf16, #tpu.memory_space<vmem>>, %arg2: memref<16x4xbf16, #tpu.memory_space<vmem>>, %arg3: memref<128x128xbf16, #tpu.memory_space<vmem>>, %arg4: memref<4x128xbf16, #tpu.memory_space<vmem>>, %arg5: memref<1x128xf32, #tpu.memory_space<vmem>>, %arg6: memref<128x128xbf16, #tpu.memory_space<vmem>>, %arg7: memref<1x128xf32, #tpu.memory_space<vmem>>, %arg8: memref<16x128xbf16, #tpu.memory_space<vmem>>) attributes {dimension_semantics = [#tpu.dimension_semantics<parallel>], iteration_bounds = array<i64: 1>, scalar_prefetch = 0 : i64, scratch_operands = 0 : i64, tpu.core_type = #tpu.core_type<tc>, window_params = [{transform_indices = @transform_0, window_bounds = array<i64: 16, 128>}, {transform_indices = @transform_1, window_bounds = array<i64: 16, 4>}, {pipeline_mode = #tpu.pipeline_mode<synchronous>, transform_indices = @transform_2, window_bounds = array<i64: 128, 128>}, {pipeline_mode = #tpu.pipeline_mode<synchronous>, transform_indices = @transform_3, window_bounds = array<i64: 4, 128>}, {pipeline_mode = #tpu.pipeline_mode<synchronous>, transform_indices = @transform_4, window_bounds = array<i64: 1, 128>}, {pipeline_mode = #tpu.pipeline_mode<synchronous>, transform_indices = @transform_5, window_bounds = array<i64: 128, 128>}, {pipeline_mode = #tpu.pipeline_mode<synchronous>, transform_indices = @transform_6, window_bounds = array<i64: 1, 128>}, {transform_indices = @transform_7, window_bounds = array<i64: 16, 128>}]} {
    %c0 = arith.constant 0 : index
    %c0_0 = arith.constant 0 : index
    %0 = vector.load %arg1[%c0, %c0_0] : memref<16x128xbf16, #tpu.memory_space<vmem>>, vector<16x128xbf16>
    %c0_1 = arith.constant 0 : index
    %c0_2 = arith.constant 0 : index
    %1 = vector.load %arg2[%c0_1, %c0_2] : memref<16x4xbf16, #tpu.memory_space<vmem>>, vector<16x4xbf16>
    %c0_3 = arith.constant 0 : index
    %c0_4 = arith.constant 0 : index
    %2 = vector.load %arg3[%c0_3, %c0_4] : memref<128x128xbf16, #tpu.memory_space<vmem>>, vector<128x128xbf16>
    %cst = arith.constant dense<0.000000e+00> : vector<16x128xf32>
    %3 = tpu.matmul %0, %2, %cst {dimension_numbers = #tpu.dot_dimension_numbers<[1], [0], [0], [1], [0, 0, 1, 1], [], []>} : vector<16x128xbf16>, vector<128x128xbf16>, vector<16x128xf32> -> vector<16x128xf32>
    %c0_5 = arith.constant 0 : index
    %c0_6 = arith.constant 0 : index
    %4 = vector.load %arg4[%c0_5, %c0_6] : memref<4x128xbf16, #tpu.memory_space<vmem>>, vector<4x128xbf16>
    %cst_7 = arith.constant dense<0.000000e+00> : vector<16x128xf32>
    %5 = tpu.matmul %1, %4, %cst_7 {dimension_numbers = #tpu.dot_dimension_numbers<[1], [0], [0], [1], [0, 0, 1, 1], [], []>} : vector<16x4xbf16>, vector<4x128xbf16>, vector<16x128xf32> -> vector<16x128xf32>
    %6 = arith.addf %3, %5 : vector<16x128xf32>
    %c0_8 = arith.constant 0 : index
    %c0_9 = arith.constant 0 : index
    %7 = vector.load %arg5[%c0_8, %c0_9] : memref<1x128xf32, #tpu.memory_space<vmem>>, vector<1x128xf32>
    %8 = vector.broadcast %7 : vector<1x128xf32> to vector<16x128xf32>
    %9 = arith.addf %6, %8 : vector<16x128xf32>
    %cst_10 = arith.constant 0.000000e+00 : f32
    %10 = vector.broadcast %cst_10 : f32 to vector<16x128xf32>
    %11 = arith.maximumf %9, %10 : vector<16x128xf32>
    %12 = arith.truncf %11 : vector<16x128xf32> to vector<16x128xbf16>
    %c0_11 = arith.constant 0 : index
    %c0_12 = arith.constant 0 : index
    %13 = vector.load %arg6[%c0_11, %c0_12] : memref<128x128xbf16, #tpu.memory_space<vmem>>, vector<128x128xbf16>
    %cst_13 = arith.constant dense<0.000000e+00> : vector<16x128xf32>
    %14 = tpu.matmul %12, %13, %cst_13 {dimension_numbers = #tpu.dot_dimension_numbers<[1], [0], [0], [1], [0, 0, 1, 1], [], []>} : vector<16x128xbf16>, vector<128x128xbf16>, vector<16x128xf32> -> vector<16x128xf32>
    %c0_14 = arith.constant 0 : index
    %c0_15 = arith.constant 0 : index
    %15 = vector.load %arg7[%c0_14, %c0_15] : memref<1x128xf32, #tpu.memory_space<vmem>>, vector<1x128xf32>
    %16 = vector.broadcast %15 : vector<1x128xf32> to vector<16x128xf32>
    %17 = arith.addf %14, %16 : vector<16x128xf32>
    %cst_16 = arith.constant 0.000000e+00 : f32
    %18 = vector.broadcast %cst_16 : f32 to vector<16x128xf32>
    %19 = arith.maximumf %17, %18 : vector<16x128xf32>
    %20 = arith.truncf %19 : vector<16x128xf32> to vector<16x128xbf16>
    %c0_17 = arith.constant 0 : index
    %c0_18 = arith.constant 0 : index
    %21 = vector.load %arg8[%c0_17, %c0_18] : memref<16x128xbf16, #tpu.memory_space<vmem>>, vector<16x128xbf16>
    tpu.vector_store %arg8[%c0_17, %c0_18], %20 {strides = array<i32>} : memref<16x128xbf16, #tpu.memory_space<vmem>>, vector<16x128xbf16>,
    return
  }
  func.func @transform_0(%arg0: i32) -> (i32, i32) {
    %c0_i32 = arith.constant 0 : i32
    %c0_i32_0 = arith.constant 0 : i32
    return %arg0, %c0_i32 : i32, i32
  }
  func.func @transform_1(%arg0: i32) -> (i32, i32) {
    %c0_i32 = arith.constant 0 : i32
    %c0_i32_0 = arith.constant 0 : i32
    return %arg0, %c0_i32 : i32, i32
  }
  func.func @transform_2(%arg0: i32) -> (i32, i32) {
    %c0_i32 = arith.constant 0 : i32
    %c0_i32_0 = arith.constant 0 : i32
    %c0_i32_1 = arith.constant 0 : i32
    return %c0_i32, %c0_i32_0 : i32, i32
  }
  func.func @transform_3(%arg0: i32) -> (i32, i32) {
    %c0_i32 = arith.constant 0 : i32
    %c0_i32_0 = arith.constant 0 : i32
    %c0_i32_1 = arith.constant 0 : i32
    return %c0_i32, %c0_i32_0 : i32, i32
  }
  func.func @transform_4(%arg0: i32) -> (i32, i32) {
    %c0_i32 = arith.constant 0 : i32
    %c0_i32_0 = arith.constant 0 : i32
    %c0_i32_1 = arith.constant 0 : i32
    return %c0_i32, %c0_i32_0 : i32, i32
  }
  func.func @transform_5(%arg0: i32) -> (i32, i32) {
    %c0_i32 = arith.constant 0 : i32
    %c0_i32_0 = arith.constant 0 : i32
    %c0_i32_1 = arith.constant 0 : i32
    return %c0_i32, %c0_i32_0 : i32, i32
  }
  func.func @transform_6(%arg0: i32) -> (i32, i32) {
    %c0_i32 = arith.constant 0 : i32
    %c0_i32_0 = arith.constant 0 : i32
    %c0_i32_1 = arith.constant 0 : i32
    return %c0_i32, %c0_i32_0 : i32, i32
  }
  func.func @transform_7(%arg0: i32) -> (i32, i32) {
    %c0_i32 = arith.constant 0 : i32
    %c0_i32_0 = arith.constant 0 : i32
    return %arg0, %c0_i32 : i32, i32
  }
}

</mosaic_0001>

<bundles_post_ra>
// kernel: tpu_custom_call.1
= control target key start
LH: loop header
LB: loop body
LE: loop exit
PB: predicated region body
PF: predicated region fallthrough
CT: control target
= control target key end

     0   :  { %12 = vsyncpa [#allocation3], 0  ;;  %s552_s0 = inlined_call_operand.vmem [shape: bf16[16,128], index: 0, kind: input, shape index: {}]   ;;  %s553_s1 = inlined_call_operand.vmem [shape: bf16[16,4], index: 1, kind: input, shape index: {}]   ;;  %s554_s2 = inlined_call_operand.hbm [shape: bf16[128,128], index: 2, kind: input, shape index: {}]   ;;  %s555_s3 = inlined_call_operand.vmem [shape: bf16[4,128], index: 3, kind: input, shape index: {}]   ;;  %s556_s4 = inlined_call_operand.vmem [shape: f32[1,128], index: 4, kind: input, shape index: {}]   ;;  %s557_s5 = inlined_call_operand.hbm [shape: bf16[128,128], index: 5, kind: input, shape index: {}]   ;;  %s558_s6 = inlined_call_operand.vmem [shape: f32[1,128], index: 6, kind: input, shape index: {}]   ;;  %s559_s7 = inlined_call_operand.hbm [shape: bf16[16,128], index: 7, kind: output, shape index: {}]  }
   0x1   :  { %13 = vsyncpa [#allocation6], 0 }
   0x2   :  { %14 = vsyncpa [#allocation4], 0  ;;  %s23_s26 = sshll.u32 %s554_s2, 4  ;;  %s474_s27 = smov [#allocation2]   ;;  %s24_s26 = int_to_ptr.hbm [resolvable:$true] %s23_s26 }
   0x3   :  { %s25_s28 = sshll.u32 %s474_s27, 4  ;;  %s40_s8 = sshll.u32 %s557_s5, 4  ;;  %s26_s28 = int_to_ptr.vmem [resolvable:$true] %s25_s28  ;;  %s41_s8 = int_to_ptr.hbm [resolvable:$true] %s40_s8 }
   0x4   :  { %s475_s9 = smov 64   ;;  %s476_s10 = smov 4  }
   0x5   :  { %31 = dma.hbm_to_vmem [thread:$0]  %s24_s26, 1024, %s26_s28, [#allocation3], %s475_s9, %s475_s9, %s476_s10  }
   0x6   :  { %s477_s11 = smov [#allocation5]  }
   0x7   :  { %s42_s12 = sshll.u32 %s477_s11, 4  ;;  %s43_s12 = int_to_ptr.vmem [resolvable:$true] %s42_s12 }
   0x8   :  { %48 = dma.hbm_to_vmem [thread:$0]  %s41_s8, 1024, %s43_s12, [#allocation6], %s475_s9, %s475_s9, %s476_s10  }
   0x9   :  { %468 = dma.done.wait [#allocation3], 1024  }
   0xa   :  { %469 = vsyncadd [#allocation3], 4294966272 }
   0xb   :  { %470 = dma.done.wait [#allocation6], 1024  }
   0xc   :  { %471 = vsyncadd [#allocation6], 4294966272  ;;  %vm90_vm0 = vcmask 1041408   ;;  %v375_v0 = vld [vmem:[#allocation2 + $0x38] sm:$0xff]  ;;  %v80_v1 = vld [vmem:[%s555_s3] sm:$0x3] }
   0xd   :  { %162 = vmatpush.bf16.msra.mxu1 %v375_v0  ;;  %v374_v2 = vld [vmem:[#allocation2 + $0x30] sm:$0xff]  ;;  %v92_v3 = vsel %vm90_vm0, %v80_v1, 0  ;;  %v367_v4 = vld [vmem:[%s553_s1] sm:$0xff]  ;;  %vm86_vm1 = vcmask 31744   ;;  %v383_v5 = vld [vmem:[#allocation5 + $0x38] sm:$0xff]  ;;  %s478_s18 = smov [#allocation7]  }
   0xe   :  { %101 = vmatpush.bf16.msra.mxu0 %v92_v3  ;;  %253 = vmatpush.bf16.msra.mxu2 %v383_v5  ;;  %v382_v6 = vld [vmem:[#allocation5 + $0x30] sm:$0xff]  ;;  %v373_v7 = vld [vmem:[#allocation2 + $0x28] sm:$0xff]  ;;  %v372_v8 = vld [vmem:[#allocation2 + $0x20] sm:$0xff]  ;;  %s277_s19 = sshll.u32 %s478_s18, 4  ;;  %s279_s21 = sshll.u32 %s559_s7, 4  ;;  %s278_s19 = int_to_ptr.vmem [resolvable:$true] %s277_s19  ;;  %s280_s21 = int_to_ptr.hbm [resolvable:$true] %s279_s21 }
   0xf   :  { %v371_v9 = vld [vmem:[#allocation2 + $0x18] sm:$0xff]  ;;  %v370_v10 = vld [vmem:[#allocation2 + $0x10] sm:$0xff]  ;;  %v369_v11 = vld [vmem:[#allocation2 + $0x8] sm:$0xff] }
  0x10   :  { %v368_v12 = vld [vmem:[#allocation2] sm:$0xff]  ;;  %v381_v14 = vld [vmem:[#allocation5 + $0x28] sm:$0xff]  ;;  %v379_v16 = vld [vmem:[#allocation5 + $0x18] sm:$0xff] }
  0x11   :  { %163 = vmatpush.bf16.msra.mxu1 %v374_v2  ;;  %297 = vmatmul.msk.bf16.vlgmr.msra.gmra.mxu0 %vm86_vm1, %v367_v4  ;;  %v366_v13 = vld [vmem:[%s552_s0] sm:$0xff]  ;;  %v378_v17 = vld [vmem:[#allocation5 + $0x10] sm:$0xff]  ;;  %v377_v18 = vld [vmem:[#allocation5 + $0x8] sm:$0xff] }
  0x12   :  { %254 = vmatpush.bf16.msra.mxu2 %v382_v6  ;;  %v380_v15 = vld [vmem:[#allocation5 + $0x20] sm:$0xff] }
  0x13   :  { %v376_v19 = vld [vmem:[#allocation5] sm:$0xff] }
  0x14   :  { %v394_v23 = vld [vmem:[%s556_s4] ss:$0 sm:$0xff] }
  0x15   :  { %164 = vmatpush.bf16.msra.mxu1 %v373_v7  ;;  %v395_v33 = vld [vmem:[%s558_s6] ss:$0 sm:$0xff] }
  0x16   :  { %255 = vmatpush.bf16.msra.mxu2 %v381_v14 }
  0x19   :  { %165 = vmatpush.bf16.msra.mxu1 %v372_v8 }
  0x1a   :  { %256 = vmatpush.bf16.msra.mxu2 %v380_v15 }
  0x1d   :  { %166 = vmatpush.bf16.msra.mxu1 %v371_v9 }
  0x1e   :  { %257 = vmatpush.bf16.msra.mxu2 %v379_v16 }
  0x21   :  { %167 = vmatpush.bf16.msra.mxu1 %v370_v10 }
  0x22   :  { %258 = vmatpush.bf16.msra.mxu2 %v378_v17 }
  0x25   :  { %168 = vmatpush.bf16.msra.mxu1 %v369_v11 }
  0x26   :  { %259 = vmatpush.bf16.msra.mxu2 %v377_v18 }
  0x29   :  { %169 = vmatpush.bf16.msra.mxu1 %v368_v12 }
  0x2a   :  { %260 = vmatpush.bf16.msra.mxu2 %v376_v19 }
  0x2c   :  { %170 = vmatmul.bf16.vlgmr.msra.gmra.mxu1 %v366_v13 }
  0x8e   :  { %v103_v20 = vpop.f32.mrf.mxu0 }
  0x96   :  { %v105_v24 = vpop.f32.mrf.mxu0 }
  0xa9   :  { %v171_v21 = vpop.f32.mrf.mxu1 }
  0xaa   :  { %v172_v22 = vadd.f32 %v171_v21, %v103_v20 }
  0xac   :  { %v180_v26 = vadd.f32 %v394_v23, %v172_v22 }
  0xae   :  { %v182_v29 = vmax.f32 %v180_v26, 0.0 }
  0xb1   :  { %v173_v25 = vpop.f32.mrf.mxu1 }
  0xb2   :  { %v174_v27 = vadd.f32 %v173_v25, %v105_v24 }
  0xb4   :  { %v181_v28 = vadd.f32 %v394_v23, %v174_v27 }
  0xb6   :  { %v183_v30 = vmax.f32 %v181_v28, 0.0 }
  0xb8   :  { %v184_v31 = vpack.c.bf16 %v183_v30, %v182_v29 }
  0xba   :  { %261 = vmatmul.bf16.vlgmr.msra.gmra.mxu2 %v184_v31 }
 0x13d   :  { %v262_v32 = vpop.f32.mrf.mxu2 }
 0x13e   :  { %v263_v34 = vadd.f32 %v395_v33, %v262_v32 }
 0x140   :  { %v267_v37 = vmax.f32 %v263_v34, 0.0 }
 0x145   :  { %v264_v35 = vpop.f32.mrf.mxu2 }
 0x146   :  { %v265_v36 = vadd.f32 %v395_v33, %v264_v35 }
 0x148   :  { %v268_v38 = vmax.f32 %v265_v36, 0.0 }
 0x14a   :  { %v387_v39 = vpack.c.bf16 %v268_v38, %v267_v37 }
 0x14c   :  { %388 = vst [vmem:[#allocation7] sm:$0xff] %v387_v39  }
 0x14d   :  { %285 = dma.vmem_to_hbm [thread:$0]  %s278_s19, 128, %s280_s21, [#allocation4], %s475_s9, %s475_s9, %s476_s10  }
 0x14e   :  { %472 = dma.done.wait [#allocation4], 128  }
 0x14f   :  { %473 = vsyncadd [#allocation4], 4294967168 }
 0x150   :  { %290 = vsyncpa [#allocation3], 1 }
 0x151   :  { %291 = vsyncpa [#allocation6], 1 }
 0x152   :  { %292 = vsyncpa [#allocation4], 1 }

</bundles_post_ra>
